<compile_context>
chip_gen: v5e
topology: v5e:2x2
jax: 0.10.0
libtpu: 0.0.40
codegen_flags: <defaults>
</compile_context>

<pallas_src>
import jax
import jax.numpy as jnp
from jax.experimental import pallas as pl
from jax.experimental.pallas import tpu as pltpu


LANE = 128                      # pad every hidden / output width to 128 lanes
COMPUTE_DTYPE = jnp.bfloat16    # MXU-native on v5e/v6e/v7x; halves HBM bytes
TB_MAX = 2048                   # rows per grid step (review: 2-4K; fits v7x VMEM)


def _round_up(x, m):
    return (x + m - 1) // m * m


def _mlp_encoder_kernel(x_ref,
                        w1_ref, w2_ref, w3_ref, w4_ref,
                        b_ref,
                        o_ref):
    """One batch tile of the fused 4-layer MLP.

    x_ref:  (TB, 216) f32 — cast to bf16 in-kernel (no wrapper cast pass).
    w*_ref: bf16, (in, out) pre-transposed + zero-padded to 128 output lanes.
    b_ref:  (8, 128) f32 — rows 0..3 hold the four zero-padded biases.
    o_ref:  (TB, 128) bf16 — lane-dense unmasked store; padded lanes stay 0.
    """
    cdt = w1_ref.dtype

    h = x_ref[...].astype(cdt)                                            # bf16

    h = jnp.dot(h, w1_ref[...], preferred_element_type=jnp.float32) + b_ref[0:1, :]
    h = jnp.maximum(h, 0.0).astype(cdt)

    h = jnp.dot(h, w2_ref[...], preferred_element_type=jnp.float32) + b_ref[1:2, :]
    h = jnp.maximum(h, 0.0).astype(cdt)

    h = jnp.dot(h, w3_ref[...], preferred_element_type=jnp.float32) + b_ref[2:3, :]
    h = jnp.maximum(h, 0.0).astype(cdt)

    h = jnp.dot(h, w4_ref[...], preferred_element_type=jnp.float32) + b_ref[3:4, :]
    o_ref[...] = jnp.maximum(h, 0.0).astype(o_ref.dtype)


def prepare_params(params, compute_dtype=COMPUTE_DTYPE):
    """One-time preprocessing of PyTorch-layout params (keep out of hot path).

    - transpose (out, in) -> (in, out) so the kernel computes y = x @ W + b
    - zero-pad every hidden / output width to 128 lanes (padded lanes remain
      exactly 0 through bias add + ReLU)
    - cast weights to bf16; pack the four biases into one (8, 128) f32 array
    """
    prepped = {}
    bias = jnp.zeros((8, LANE), jnp.float32)
    for i in (1, 2, 3, 4):
        w = jnp.asarray(params[f"w{i}"])          # (out, in)  PyTorch layout
        b = jnp.asarray(params[f"b{i}"])          # (out,)
        out_d, in_d = w.shape
        in_p = in_d if i == 1 else LANE           # layer-1 input width stays 216
        wp = jnp.zeros((in_p, LANE), compute_dtype)
        wp = wp.at[:in_d, :out_d].set(w.T.astype(compute_dtype))
        prepped[f"w{i}"] = wp
        bias = bias.at[i - 1, :out_d].set(b.astype(jnp.float32))
    prepped["bias"] = bias
    return prepped


def encoder_forward(x, prepped):
    """x: (B, in_channels) f32; prepped: output of prepare_params.

    Returns the full (B, 128) bf16 block (valid output in the first 27 lanes;
    padded lanes are exactly 0).  The column slice is left to the consumer so
    it can fuse downstream instead of forcing an extra HBM pass here.
    """
    B, C = x.shape

    # Tile selection: up to TB_MAX rows per step; aim for >=2 tiles so v7x's
    # two TensorCores both get work (dimension_semantics="parallel"), but
    # never exceed one sublane-padded tile for tiny batches.  Round to 16 for
    # bf16 sublane packing (8 for the degenerate small-batch case).
    TB = min(TB_MAX, _round_up(pl.cdiv(B, 2), 16))
    TB = max(8, min(TB, _round_up(B, 8)))
    grid = (pl.cdiv(B, TB),)          # ragged last block is fine: row-local math

    const = lambda i: (0, 0)          # weights/biases stay VMEM-resident
    in_specs = [pl.BlockSpec((TB, C), lambda i: (i, 0))]
    args = [x]
    for k in ("w1", "w2", "w3", "w4"):
        in_specs.append(pl.BlockSpec(prepped[k].shape, const))
        args.append(prepped[k])
    in_specs.append(pl.BlockSpec(prepped["bias"].shape, const))
    args.append(prepped["bias"])

    flops = 2 * B * (C * LANE + 3 * LANE * LANE)
    bytes_accessed = (x.size * x.dtype.itemsize                      # f32 x read
                      + sum(v.size * v.dtype.itemsize for v in prepped.values())
                      + B * LANE * jnp.dtype(COMPUTE_DTYPE).itemsize)  # bf16 out

    return pl.pallas_call(
        _mlp_encoder_kernel,
        out_shape=jax.ShapeDtypeStruct((B, LANE), COMPUTE_DTYPE),
        grid=grid,
        in_specs=in_specs,
        out_specs=pl.BlockSpec((TB, LANE), lambda i: (i, 0)),
        compiler_params=pltpu.CompilerParams(
            dimension_semantics=("parallel",),      # shard tiles across TCs (v7x)
            vmem_limit_bytes=32 * 1024 * 1024),
        cost_estimate=pl.CostEstimate(
            flops=flops, transcendentals=0, bytes_accessed=bytes_accessed),
    )(*args)


def init_params(key, in_channels=216, dtype=jnp.float32):
    """Deterministic synthetic init mimicking nn.Linear shapes/init."""
    dims = [in_channels, in_channels // 2, in_channels // 4,
            in_channels // 8, in_channels // 8]
    params = {}
    for i in range(4):
        key, kw, kb = jax.random.split(key, 3)
        fan_in, fan_out = dims[i], dims[i + 1]
        bound = 1.0 / jnp.sqrt(fan_in)
        params[f"w{i + 1}"] = jax.random.uniform(
            kw, (fan_out, fan_in), dtype, minval=-bound, maxval=bound)
        params[f"b{i + 1}"] = jax.random.uniform(
            kb, (fan_out,), dtype, minval=-bound, maxval=bound)
    return params


def encoder_reference(x, params):
    """Pure-JAX f32 reference matching the PyTorch forward (ReLU after every layer)."""
    h = x
    for i in (1, 2, 3, 4):
        h = h @ params[f"w{i}"].T + params[f"b{i}"]
        h = jnp.maximum(h, 0.0)
    return h


if __name__ == "__main__":
    key = jax.random.PRNGKey(0)
    in_channels = 216
    batch = 8

    kx, kp = jax.random.split(key)
    x = jax.random.normal(kx, (batch, in_channels), dtype=jnp.float32)
    params = init_params(kp, in_channels)

    prepped = prepare_params(params)          # one-time, out of the hot path
    out_dim = params["w4"].shape[0]           # 27

    out_padded = encoder_forward(x, prepped)  # (B, 128) bf16, lane-dense
    out_padded = jax.block_until_ready(out_padded)

    out = out_padded[:, :out_dim].astype(jnp.float32)   # consumer-side column slice

    ref = encoder_reference(x, params)
    assert out.shape == (batch, in_channels // 8), out.shape
    # bf16 inputs/weights/output with f32 accumulation -> bf16-level tolerance.
    assert jnp.allclose(out, ref, atol=5e-2, rtol=5e-2), "mismatch vs reference"

    print("KERNEL_OK")
</pallas_src>

<mosaic_0001>
module attributes {stable_mosaic.version = 11 : i64} {
  func.func @_mlp_encoder_kernel(%arg0: i32, %arg1: memref<8x216xf32, #tpu.memory_space<vmem>>, %arg2: memref<216x128xbf16, #tpu.memory_space<vmem>>, %arg3: memref<128x128xbf16, #tpu.memory_space<vmem>>, %arg4: memref<128x128xbf16, #tpu.memory_space<vmem>>, %arg5: memref<128x128xbf16, #tpu.memory_space<vmem>>, %arg6: memref<8x128xf32, #tpu.memory_space<vmem>>, %arg7: memref<8x128xbf16, #tpu.memory_space<vmem>>) attributes {dimension_semantics = [#tpu.dimension_semantics<parallel>], iteration_bounds = array<i64: 1>, scalar_prefetch = 0 : i64, scratch_operands = 0 : i64, tpu.core_type = #tpu.core_type<tc>, window_params = [{transform_indices = @transform_0, window_bounds = array<i64: 8, 216>}, {pipeline_mode = #tpu.pipeline_mode<synchronous>, transform_indices = @transform_1, window_bounds = array<i64: 216, 128>}, {pipeline_mode = #tpu.pipeline_mode<synchronous>, transform_indices = @transform_2, window_bounds = array<i64: 128, 128>}, {pipeline_mode = #tpu.pipeline_mode<synchronous>, transform_indices = @transform_3, window_bounds = array<i64: 128, 128>}, {pipeline_mode = #tpu.pipeline_mode<synchronous>, transform_indices = @transform_4, window_bounds = array<i64: 128, 128>}, {pipeline_mode = #tpu.pipeline_mode<synchronous>, transform_indices = @transform_5, window_bounds = array<i64: 8, 128>}, {transform_indices = @transform_6, window_bounds = array<i64: 8, 128>}]} {
    %c0 = arith.constant 0 : index
    %c0_0 = arith.constant 0 : index
    %0 = vector.load %arg1[%c0, %c0_0] : memref<8x216xf32, #tpu.memory_space<vmem>>, vector<8x216xf32>
    %1 = arith.truncf %0 : vector<8x216xf32> to vector<8x216xbf16>
    %c0_1 = arith.constant 0 : index
    %c0_2 = arith.constant 0 : index
    %2 = vector.load %arg2[%c0_1, %c0_2] : memref<216x128xbf16, #tpu.memory_space<vmem>>, vector<216x128xbf16>
    %cst = arith.constant dense<0.000000e+00> : vector<8x128xf32>
    %3 = tpu.matmul %1, %2, %cst {dimension_numbers = #tpu.dot_dimension_numbers<[1], [0], [0], [1], [0, 0, 1, 1], [], []>} : vector<8x216xbf16>, vector<216x128xbf16>, vector<8x128xf32> -> vector<8x128xf32>
    %c0_3 = arith.constant 0 : index
    %c0_4 = arith.constant 0 : index
    %4 = vector.load %arg6[%c0_3, %c0_4] : memref<8x128xf32, #tpu.memory_space<vmem>>, vector<1x128xf32>
    %5 = vector.broadcast %4 : vector<1x128xf32> to vector<8x128xf32>
    %6 = arith.addf %3, %5 : vector<8x128xf32>
    %cst_5 = arith.constant 0.000000e+00 : f32
    %7 = vector.broadcast %cst_5 : f32 to vector<8x128xf32>
    %8 = arith.maximumf %6, %7 : vector<8x128xf32>
    %9 = arith.truncf %8 : vector<8x128xf32> to vector<8x128xbf16>
    %c0_6 = arith.constant 0 : index
    %c0_7 = arith.constant 0 : index
    %10 = vector.load %arg3[%c0_6, %c0_7] : memref<128x128xbf16, #tpu.memory_space<vmem>>, vector<128x128xbf16>
    %cst_8 = arith.constant dense<0.000000e+00> : vector<8x128xf32>
    %11 = tpu.matmul %9, %10, %cst_8 {dimension_numbers = #tpu.dot_dimension_numbers<[1], [0], [0], [1], [0, 0, 1, 1], [], []>} : vector<8x128xbf16>, vector<128x128xbf16>, vector<8x128xf32> -> vector<8x128xf32>
    %c1 = arith.constant 1 : index
    %c0_9 = arith.constant 0 : index
    %12 = vector.load %arg6[%c1, %c0_9] : memref<8x128xf32, #tpu.memory_space<vmem>>, vector<1x128xf32>
    %13 = vector.broadcast %12 : vector<1x128xf32> to vector<8x128xf32>
    %14 = arith.addf %11, %13 : vector<8x128xf32>
    %cst_10 = arith.constant 0.000000e+00 : f32
    %15 = vector.broadcast %cst_10 : f32 to vector<8x128xf32>
    %16 = arith.maximumf %14, %15 : vector<8x128xf32>
    %17 = arith.truncf %16 : vector<8x128xf32> to vector<8x128xbf16>
    %c0_11 = arith.constant 0 : index
    %c0_12 = arith.constant 0 : index
    %18 = vector.load %arg4[%c0_11, %c0_12] : memref<128x128xbf16, #tpu.memory_space<vmem>>, vector<128x128xbf16>
    %cst_13 = arith.constant dense<0.000000e+00> : vector<8x128xf32>
    %19 = tpu.matmul %17, %18, %cst_13 {dimension_numbers = #tpu.dot_dimension_numbers<[1], [0], [0], [1], [0, 0, 1, 1], [], []>} : vector<8x128xbf16>, vector<128x128xbf16>, vector<8x128xf32> -> vector<8x128xf32>
    %c2 = arith.constant 2 : index
    %c0_14 = arith.constant 0 : index
    %20 = vector.load %arg6[%c2, %c0_14] : memref<8x128xf32, #tpu.memory_space<vmem>>, vector<1x128xf32>
    %21 = vector.broadcast %20 : vector<1x128xf32> to vector<8x128xf32>
    %22 = arith.addf %19, %21 : vector<8x128xf32>
    %cst_15 = arith.constant 0.000000e+00 : f32
    %23 = vector.broadcast %cst_15 : f32 to vector<8x128xf32>
    %24 = arith.maximumf %22, %23 : vector<8x128xf32>
    %25 = arith.truncf %24 : vector<8x128xf32> to vector<8x128xbf16>
    %c0_16 = arith.constant 0 : index
    %c0_17 = arith.constant 0 : index
    %26 = vector.load %arg5[%c0_16, %c0_17] : memref<128x128xbf16, #tpu.memory_space<vmem>>, vector<128x128xbf16>
    %cst_18 = arith.constant dense<0.000000e+00> : vector<8x128xf32>
    %27 = tpu.matmul %25, %26, %cst_18 {dimension_numbers = #tpu.dot_dimension_numbers<[1], [0], [0], [1], [0, 0, 1, 1], [], []>} : vector<8x128xbf16>, vector<128x128xbf16>, vector<8x128xf32> -> vector<8x128xf32>
    %c3 = arith.constant 3 : index
    %c0_19 = arith.constant 0 : index
    %28 = vector.load %arg6[%c3, %c0_19] : memref<8x128xf32, #tpu.memory_space<vmem>>, vector<1x128xf32>
    %29 = vector.broadcast %28 : vector<1x128xf32> to vector<8x128xf32>
    %30 = arith.addf %27, %29 : vector<8x128xf32>
    %cst_20 = arith.constant 0.000000e+00 : f32
    %31 = vector.broadcast %cst_20 : f32 to vector<8x128xf32>
    %32 = arith.maximumf %30, %31 : vector<8x128xf32>
    %33 = arith.truncf %32 : vector<8x128xf32> to vector<8x128xbf16>
    %c0_21 = arith.constant 0 : index
    %c0_22 = arith.constant 0 : index
    %34 = vector.load %arg7[%c0_21, %c0_22] : memref<8x128xbf16, #tpu.memory_space<vmem>>, vector<8x128xbf16>
    tpu.vector_store %arg7[%c0_21, %c0_22], %33 {strides = array<i32>} : memref<8x128xbf16, #tpu.memory_space<vmem>>, vector<8x128xbf16>,
    return
  }
  func.func @transform_0(%arg0: i32) -> (i32, i32) {
    %c0_i32 = arith.constant 0 : i32
    %c0_i32_0 = arith.constant 0 : i32
    return %arg0, %c0_i32 : i32, i32
  }
  func.func @transform_1(%arg0: i32) -> (i32, i32) {
    %c0_i32 = arith.constant 0 : i32
    %c0_i32_0 = arith.constant 0 : i32
    %c0_i32_1 = arith.constant 0 : i32
    return %c0_i32, %c0_i32_0 : i32, i32
  }
  func.func @transform_2(%arg0: i32) -> (i32, i32) {
    %c0_i32 = arith.constant 0 : i32
    %c0_i32_0 = arith.constant 0 : i32
    %c0_i32_1 = arith.constant 0 : i32
    return %c0_i32, %c0_i32_0 : i32, i32
  }
  func.func @transform_3(%arg0: i32) -> (i32, i32) {
    %c0_i32 = arith.constant 0 : i32
    %c0_i32_0 = arith.constant 0 : i32
    %c0_i32_1 = arith.constant 0 : i32
    return %c0_i32, %c0_i32_0 : i32, i32
  }
  func.func @transform_4(%arg0: i32) -> (i32, i32) {
    %c0_i32 = arith.constant 0 : i32
    %c0_i32_0 = arith.constant 0 : i32
    %c0_i32_1 = arith.constant 0 : i32
    return %c0_i32, %c0_i32_0 : i32, i32
  }
  func.func @transform_5(%arg0: i32) -> (i32, i32) {
    %c0_i32 = arith.constant 0 : i32
    %c0_i32_0 = arith.constant 0 : i32
    %c0_i32_1 = arith.constant 0 : i32
    return %c0_i32, %c0_i32_0 : i32, i32
  }
  func.func @transform_6(%arg0: i32) -> (i32, i32) {
    %c0_i32 = arith.constant 0 : i32
    %c0_i32_0 = arith.constant 0 : i32
    return %arg0, %c0_i32 : i32, i32
  }
}

</mosaic_0001>

<bundles_post_ra>
// kernel: tpu_custom_call.1
= control target key start
LH: loop header
LB: loop body
LE: loop exit
PB: predicated region body
PF: predicated region fallthrough
CT: control target
= control target key end

     0   :  { %11 = vsyncpa [#allocation3], 0  ;;  %s983_s0 = inlined_call_operand.hbm [shape: f32[8,216], index: 0, kind: input, shape index: {}]   ;;  %s984_s1 = inlined_call_operand.hbm [shape: bf16[216,128], index: 1, kind: input, shape index: {}]   ;;  %s985_s2 = inlined_call_operand.hbm [shape: bf16[128,128], index: 2, kind: input, shape index: {}]   ;;  %s986_s3 = inlined_call_operand.hbm [shape: bf16[128,128], index: 3, kind: input, shape index: {}]   ;;  %s987_s4 = inlined_call_operand.hbm [shape: bf16[128,128], index: 4, kind: input, shape index: {}]   ;;  %s988_s5 = inlined_call_operand.hbm [shape: f32[8,128], index: 5, kind: input, shape index: {}]   ;;  %s989_s6 = inlined_call_operand.hbm [shape: bf16[8,128], index: 6, kind: output, shape index: {}]  }
   0x1   :  { %12 = vsyncpa [#allocation6], 0 }
   0x2   :  { %13 = vsyncpa [#allocation9], 0 }
   0x3   :  { %14 = vsyncpa [#allocation12], 0  ;;  %s31_s23 = sshll.u32 %s984_s1, 4  ;;  %s32_s23 = int_to_ptr.hbm [resolvable:$true] %s31_s23 }
   0x4   :  { %15 = vsyncpa [#allocation4], 0  ;;  %s906_s24 = smov [#allocation5]   ;;  %s57_s28 = sshll.u32 %s986_s3, 4  ;;  %s58_s28 = int_to_ptr.hbm [resolvable:$true] %s57_s28 }
   0x5   :  { %s33_s25 = sshll.u32 %s906_s24, 4  ;;  %s907_s29 = smov 64   ;;  %s34_s25 = int_to_ptr.vmem [resolvable:$true] %s33_s25 }
   0x6   :  { %s908_s30 = smov 4   ;;  %s909_s7 = smov [#allocation8]  }
   0x7   :  { %39 = dma.hbm_to_vmem [thread:$0]  %s32_s23, 1728, %s34_s25, [#allocation6], %s907_s29, %s907_s29, %s908_s30  }
   0x8   :  { %s59_s8 = sshll.u32 %s909_s7, 4  ;;  %s21_s10 = sshll.u32 %s983_s0, 4  ;;  %s60_s8 = int_to_ptr.vmem [resolvable:$true] %s59_s8  ;;  %s22_s10 = int_to_ptr.hbm [resolvable:$true] %s21_s10 }
   0x9   :  { %65 = dma.hbm_to_vmem [thread:$0]  %s58_s28, 1024, %s60_s8, [#allocation9], %s907_s29, %s907_s29, %s908_s30  }
   0xa   :  { %s44_s12 = sshll.u32 %s985_s2, 4  ;;  %s910_s13 = smov [#allocation2]   ;;  %s45_s12 = int_to_ptr.hbm [resolvable:$true] %s44_s12 }
   0xb   :  { %s23_s14 = sshll.u32 %s910_s13, 4  ;;  %s911_s15 = smov [#allocation7]   ;;  %s24_s14 = int_to_ptr.vmem [resolvable:$true] %s23_s14 }
   0xc   :  { %26 = dma.hbm_to_vmem [thread:$0]  %s22_s10, 256, %s24_s14, [#allocation3]  }
   0xd   :  { %s46_s16 = sshll.u32 %s911_s15, 4  ;;  %s70_s0 = sshll.u32 %s987_s4, 4  ;;  %s47_s16 = int_to_ptr.vmem [resolvable:$true] %s46_s16  ;;  %s71_s0 = int_to_ptr.hbm [resolvable:$true] %s70_s0 }
   0xe   :  { %52 = dma.hbm_to_vmem [thread:$0]  %s45_s12, 1024, %s47_s16, [#allocation6], %s907_s29, %s907_s29, %s908_s30  }
   0xf   :  { %s84_s2 = sshll.u32 %s988_s5, 4  ;;  %s912_s21 = smov [#allocation10]   ;;  %s85_s2 = int_to_ptr.hbm [resolvable:$true] %s84_s2 }
  0x10   :  { %s72_s22 = sshll.u32 %s912_s21, 4  ;;  %s913_s23 = smov [#allocation11]   ;;  %s73_s22 = int_to_ptr.vmem [resolvable:$true] %s72_s22 }
  0x11   :  { %78 = dma.hbm_to_vmem [thread:$0]  %s71_s0, 1024, %s73_s22, [#allocation9], %s907_s29, %s907_s29, %s908_s30  }
  0x12   :  { %s86_s4 = sshll.u32 %s913_s23, 4  ;;  %s87_s4 = int_to_ptr.vmem [resolvable:$true] %s86_s4 }
  0x13   :  { %89 = dma.hbm_to_vmem [thread:$0]  %s85_s2, 128, %s87_s4, [#allocation12]  }
  0x14   :  { %896 = dma.done.wait [#allocation3], 256  }
  0x15   :  { %897 = vsyncadd [#allocation3], 4294967040 }
  0x16   :  { %898 = dma.done.wait [#allocation6], 2752  }
  0x17   :  { %899 = vsyncadd [#allocation6], 4294964544 }
  0x18   :  { %900 = dma.done.wait [#allocation9], 2048  }
  0x19   :  { %901 = vsyncadd [#allocation9], 4294965248 }
  0x1a   :  { %902 = dma.done.wait [#allocation12], 128  }
  0x1b   :  { %903 = vsyncadd [#allocation12], 4294967168  ;;  %v685_v0 = vld [vmem:[#allocation5 + $0x38] sm:$0xff]  ;;  %v145_v1 = vld [vmem:[#allocation5 + $0x68] sm:$0xf]  ;;  %vm233_vm0 = vcmask 1043456  }
  0x1c   :  { %v201_v2 = vunpack.c.l.b16 %v145_v1  ;;  %237 = vmatpush.bf16.msra.mxu0 %v685_v0  ;;  %v684_v3 = vld [vmem:[#allocation5 + $0x30] sm:$0xff]  ;;  %v698_v6 = vld [vmem:[#allocation7 + $0x38] sm:$0xff]  ;;  %v697_v9 = vld [vmem:[#allocation7 + $0x30] sm:$0xff]  ;;  %vm229_vm1 = vcmask 719872   ;;  %s914_s5 = smov [#allocation13]   ;;  %s516_s27 = sshll.u32 %s989_s6, 4  ;;  %s517_s27 = int_to_ptr.hbm [resolvable:$true] %s516_s27 }
  0x1d   :  { %v690_v7 = vld [vmem:[#allocation5 + $0x60] sm:$0xff]  ;;  %v683_v8 = vld [vmem:[#allocation5 + $0x28] sm:$0xff]  ;;  %331 = vmatpush.bf16.msra.mxu2 %v698_v6  ;;  %v689_v10 = vld [vmem:[#allocation5 + $0x58] sm:$0xff]  ;;  %s514_s24 = sshll.u32 %s914_s5, 4  ;;  %s515_s24 = int_to_ptr.vmem [resolvable:$true] %s514_s24 }
  0x1e   :  { %v215_v4 = vpack.c.b16 %v201_v2, %v201_v2  ;;  %v682_v11 = vld [vmem:[#allocation5 + $0x20] sm:$0xff]  ;;  %v696_v12 = vld [vmem:[#allocation7 + $0x28] sm:$0xff]  ;;  %v695_v15 = vld [vmem:[#allocation7 + $0x20] sm:$0xff] }
  0x1f   :  { %v688_v13 = vld [vmem:[#allocation5 + $0x50] sm:$0xff]  ;;  %v681_v14 = vld [vmem:[#allocation5 + $0x18] sm:$0xff]  ;;  %v687_v16 = vld [vmem:[#allocation5 + $0x48] sm:$0xff] }
  0x20   :  { %v235_v5 = vsel %vm233_vm0, %v215_v4, 0  ;;  %238 = vmatpush.bf16.msra.mxu0 %v684_v3  ;;  %v680_v17 = vld [vmem:[#allocation5 + $0x10] sm:$0xff]  ;;  %v694_v18 = vld [vmem:[#allocation7 + $0x18] sm:$0xff]  ;;  %v116_v21 = vld [vmem:[#allocation2 + $0x8] sm:$0xff] }
  0x21   :  { %252 = vmatpush.bf16.msra.mxu1 %v235_v5  ;;  %332 = vmatpush.bf16.msra.mxu2 %v697_v9  ;;  %v686_v19 = vld [vmem:[#allocation5 + $0x40] sm:$0xff]  ;;  %v679_v20 = vld [vmem:[#allocation5 + $0x8] sm:$0xff]  ;;  %v118_v22 = vpack.c.bf16 %v116_v21, %v116_v21  ;;  %v115_v24 = vld [vmem:[#allocation2] sm:$0xff] }
  0x22   :  { %v678_v23 = vld [vmem:[#allocation5] sm:$0xff]  ;;  %v117_v25 = vpack.c.bf16 %v115_v24, %v115_v24  ;;  %v692_v27 = vld [vmem:[#allocation7 + $0x8] sm:$0xff]  ;;  %v691_v28 = vld [vmem:[#allocation7] sm:$0xff] }
  0x23   :  { %v693_v26 = vld [vmem:[#allocation7 + $0x10] sm:$0xff]  ;;  %v706_v29 = vld [vmem:[#allocation8 + $0x38] sm:$0xff]  ;;  %v704_v31 = vld [vmem:[#allocation8 + $0x28] sm:$0xff] }
  0x24   :  { %239 = vmatpush.bf16.msra.mxu0 %v683_v8  ;;  %412 = vmatpush.bf16.msra.mxu3 %v706_v29  ;;  %v705_v30 = vld [vmem:[#allocation8 + $0x30] sm:$0xff]  ;;  %v703_v32 = vld [vmem:[#allocation8 + $0x20] sm:$0xff]  ;;  %v702_v33 = vld [vmem:[#allocation8 + $0x18] sm:$0xff] }
  0x25   :  { %253 = vmatpush.bf16.msra.mxu1 %v690_v7  ;;  %333 = vmatpush.bf16.msra.mxu2 %v696_v12  ;;  %v701_v34 = vld [vmem:[#allocation8 + $0x10] sm:$0xff]  ;;  %v724_v36 = vld [vmem:[#allocation11] ss:$0 sm:$0xff]  ;;  %v700_v44 = vld [vmem:[#allocation8 + $0x8] sm:$0xff] }
  0x26   :  { %v699_v45 = vld [vmem:[#allocation8] sm:$0xff]  ;;  %v714_v46 = vld [vmem:[#allocation10 + $0x38] sm:$0xff]  ;;  %v713_v47 = vld [vmem:[#allocation10 + $0x30] sm:$0xff] }
  0x27   :  { %v712_v48 = vld [vmem:[#allocation10 + $0x28] sm:$0xff]  ;;  %v711_v49 = vld [vmem:[#allocation10 + $0x20] sm:$0xff]  ;;  %v710_v50 = vld [vmem:[#allocation10 + $0x18] sm:$0xff] }
  0x28   :  { %240 = vmatpush.bf16.msra.mxu0 %v682_v11  ;;  %413 = vmatpush.bf16.msra.mxu3 %v705_v30  ;;  %v709_v51 = vld [vmem:[#allocation10 + $0x10] sm:$0xff]  ;;  %v725_v52 = vld [vmem:[#allocation11 + $0x1] ss:$0 sm:$0xff]  ;;  %v708_v58 = vld [vmem:[#allocation10 + $0x8] sm:$0xff] }
  0x29   :  { %254 = vmatpush.bf16.msra.mxu1 %v689_v10  ;;  %334 = vmatpush.bf16.msra.mxu2 %v695_v15  ;;  %v707_v59 = vld [vmem:[#allocation10] sm:$0xff] }
  0x2a   :  { %v726_v60 = vld [vmem:[#allocation11 + $0x2] ss:$0 sm:$0xff]  ;;  %v727_v2 = vld [vmem:[#allocation11 + $0x3] ss:$0 sm:$0xff] }
  0x2c   :  { %241 = vmatpush.bf16.msra.mxu0 %v681_v14  ;;  %414 = vmatpush.bf16.msra.mxu3 %v704_v31 }
  0x2d   :  { %255 = vmatpush.bf16.msra.mxu1 %v688_v13  ;;  %335 = vmatpush.bf16.msra.mxu2 %v694_v18 }
  0x30   :  { %242 = vmatpush.bf16.msra.mxu0 %v680_v17  ;;  %415 = vmatpush.bf16.msra.mxu3 %v703_v32 }
  0x31   :  { %256 = vmatpush.bf16.msra.mxu1 %v687_v16  ;;  %336 = vmatpush.bf16.msra.mxu2 %v693_v26 }
  0x34   :  { %243 = vmatpush.bf16.msra.mxu0 %v679_v20  ;;  %416 = vmatpush.bf16.msra.mxu3 %v702_v33 }
  0x35   :  { %257 = vmatpush.bf16.msra.mxu1 %v686_v19  ;;  %337 = vmatpush.bf16.msra.mxu2 %v692_v27 }
  0x38   :  { %581 = vmatmul.msk.bf16.vlgmr.msra.gmra.mxu1 %vm229_vm1, %v118_v22  ;;  %244 = vmatpush.bf16.msra.mxu0 %v678_v23 }
  0x39   :  { %338 = vmatpush.bf16.msra.mxu2 %v691_v28  ;;  %417 = vmatpush.bf16.msra.mxu3 %v701_v34 }
  0x3a   :  { %493 = vmatpush.bf16.msrb.mxu1 %v714_v46 }
  0x3b   :  { %245 = vmatmul.bf16.vlgmr.msra.gmra.mxu0 %v117_v25 }
  0x3d   :  { %418 = vmatpush.bf16.msra.mxu3 %v700_v44 }
  0x3e   :  { %494 = vmatpush.bf16.msrb.mxu1 %v713_v47 }
  0x41   :  { %419 = vmatpush.bf16.msra.mxu3 %v699_v45 }
  0x42   :  { %495 = vmatpush.bf16.msrb.mxu1 %v712_v48 }
  0x46   :  { %496 = vmatpush.bf16.msrb.mxu1 %v711_v49 }
  0x4a   :  { %497 = vmatpush.bf16.msrb.mxu1 %v710_v50 }
  0x4e   :  { %498 = vmatpush.bf16.msrb.mxu1 %v709_v51 }
  0x52   :  { %499 = vmatpush.bf16.msrb.mxu1 %v708_v58 }
  0x56   :  { %500 = vmatpush.bf16.msrb.mxu1 %v707_v59 }
  0xb5   :  { %v259_v35 = vpop.f32.mrf.mxu1 }
  0xb8   :  { %v246_v37 = vpop.f32.mrf.mxu0 }
  0xb9   :  { %v247_v38 = vadd.f32 %v724_v36, %v246_v37 }
  0xbb   :  { %v260_v39 = vadd.f32 %v259_v35, %v247_v38 }
  0xbd   :  { %v261_v40 = vpop.f32.mrf.mxu1  ;;  %v263_v41 = vmax.f32 %v260_v39, 0.0 }
  0xbf   :  { %v264_v42 = vpack.c.bf16 %v263_v41, %v263_v41 }
  0xc0   :  { %v248_v43 = vpop.f32.mrf.mxu0 }
  0xc1   :  { %339 = vmatmul.bf16.vlgmr.msra.gmra.mxu2 %v264_v42 }
 0x144   :  { %v340_v53 = vpop.f32.mrf.mxu2 }
 0x145   :  { %v341_v54 = vadd.f32 %v725_v52, %v340_v53 }
 0x147   :  { %v344_v55 = vmax.f32 %v341_v54, 0.0 }
 0x149   :  { %v345_v56 = vpack.c.bf16 %v344_v55, %v344_v55 }
 0x14b   :  { %420 = vmatmul.bf16.vlgmr.msra.gmra.mxu3 %v345_v56 }
 0x14c   :  { %v342_v57 = vpop.f32.mrf.mxu2 }
 0x1ce   :  { %v421_v61 = vpop.f32.mrf.mxu3 }
 0x1cf   :  { %v422_v62 = vadd.f32 %v726_v60, %v421_v61 }
 0x1d1   :  { %v425_v63 = vmax.f32 %v422_v62, 0.0 }
 0x1d3   :  { %v426_v0 = vpack.c.bf16 %v425_v63, %v425_v63 }
 0x1d5   :  { %501 = vmatmul.bf16.vlgmr.msrb.gmra.mxu1 %v426_v0 }
 0x1d6   :  { %v423_v1 = vpop.f32.mrf.mxu3 }
 0x252   :  { %v502_v3 = vpop.f32.mrf.mxu1 }
 0x253   :  { %v503_v4 = vadd.f32 %v727_v2, %v502_v3 }
 0x255   :  { %v506_v5 = vmax.f32 %v503_v4, 0.0 }
 0x257   :  { %v507_v6 = vpack.c.bf16 %v506_v5, %v506_v5 }
 0x259   :  { %508 = vst [vmem:[#allocation13] sm:$0xf] %v507_v6 }
 0x25a   :  { %v504_v7 = vpop.f32.mrf.mxu1  ;;  %519 = dma.vmem_to_hbm [thread:$0]  %s515_s24, 64, %s517_s27, [#allocation4]  }
 0x25b   :  { %904 = dma.done.wait [#allocation4], 64  }
 0x25c   :  { %905 = vsyncadd [#allocation4], 4294967232 }
 0x25d   :  { %524 = vsyncpa [#allocation3], 1 }
 0x25e   :  { %525 = vsyncpa [#allocation6], 1 }
 0x25f   :  { %526 = vsyncpa [#allocation9], 1 }
 0x260   :  { %527 = vsyncpa [#allocation12], 1 }
 0x261   :  { %528 = vsyncpa [#allocation4], 1 }

</bundles_post_ra>
